<compile_context>
chip_gen: v7x
topology: tpu7x:2x2x1
jax: 0.10.0
libtpu: 0.0.40
codegen_flags: <defaults>
</compile_context>

<pallas_src>
import functools

import jax
import jax.numpy as jnp
from jax import lax
from jax.experimental import pallas as pl
from jax.experimental.pallas import tpu as pltpu


def _pick_tile(n, target):
    """Largest multiple-of-8 divisor of n that is <= target (or n itself)."""
    if n <= target:
        return n
    for t in range(target, 7, -1):
        if n % t == 0 and t % 8 == 0:
            return t
    return n


def _vmem_limit_bytes():
    """~75% of physical VMEM (64 MiB v7x, 128 MiB v5e/v6e), with headroom."""
    cap = 64 * 1024 * 1024
    try:
        info = pltpu.get_tpu_info()
        cap = int(getattr(info, "vmem_capacity_bytes", cap))
    except Exception:
        pass
    return int(cap * 3 // 4)


# --------------------------------------------------------------------------
# Kernel 1: fused LayerNorm + QKV projection (bf16 MXU, f32 accumulate).
# --------------------------------------------------------------------------
def _ln_qkv_kernel(x_ref, gamma_ref, beta_ref, wqkv_ref, qkv_ref, *, eps):
    x = x_ref[0]                                    # (tn, D) f32
    gamma = gamma_ref[...]                          # (1, D)
    beta = beta_ref[...]                            # (1, D)

    # LayerNorm over the last dim, in f32 (matches nn.LayerNorm(dim)).
    mean = jnp.mean(x, axis=-1, keepdims=True)
    var = jnp.mean(jnp.square(x - mean), axis=-1, keepdims=True)
    xn = (x - mean) * lax.rsqrt(var + eps) * gamma + beta       # (tn, D) f32

    # QKV projection: bf16 inputs, f32 MXU accumulation, bf16 store.
    # The softmax scale is already folded into the q-columns of wqkv.
    qkv = jnp.dot(xn.astype(wqkv_ref.dtype), wqkv_ref[...],
                  preferred_element_type=jnp.float32)           # (tn, 3*inner)
    qkv_ref[0] = qkv.astype(qkv_ref.dtype)


# --------------------------------------------------------------------------
# Kernel 2: flash attention + fused per-head output projection.
# Grid: (B, q_tiles, heads, kv_tiles); heads & kv are reduction ("arbitrary").
# --------------------------------------------------------------------------
def _flash_attn_out_kernel(q_ref, k_ref, v_ref, wout_ref, o_ref,
                           m_sc, l_sc, acc_sc, oacc_sc):
    h = pl.program_id(2)
    ki = pl.program_id(3)
    nh = pl.num_programs(2)
    nk = pl.num_programs(3)

    @pl.when(jnp.logical_and(h == 0, ki == 0))
    def _():
        oacc_sc[...] = jnp.zeros_like(oacc_sc)

    @pl.when(ki == 0)
    def _():
        m_sc[...] = jnp.full_like(m_sc, -jnp.inf)
        l_sc[...] = jnp.zeros_like(l_sc)
        acc_sc[...] = jnp.zeros_like(acc_sc)

    q = q_ref[0, 0]                                 # (tq, dh) bf16, pre-scaled
    k = k_ref[0, 0]                                 # (tk, dh) bf16
    v = v_ref[0, 0]                                 # (tk, dh) bf16

    # q @ k^T without an explicit transpose: contract last dims of q and k.
    s = lax.dot_general(q, k, (((1,), (1,)), ((), ())),
                        preferred_element_type=jnp.float32)     # (tq, tk) f32

    # Online softmax update (f32 elementwise math).
    m_prev = m_sc[...]
    m_new = jnp.maximum(m_prev, jnp.max(s, axis=-1, keepdims=True))
    alpha = jnp.exp(m_prev - m_new)
    p = jnp.exp(s - m_new)                                      # (tq, tk) f32
    l_sc[...] = alpha * l_sc[...] + jnp.sum(p, axis=-1, keepdims=True)
    acc_sc[...] = alpha * acc_sc[...] + jnp.dot(
        p.astype(v.dtype), v, preferred_element_type=jnp.float32)
    m_sc[...] = m_new

    # Last kv tile of this head: normalize and fold the head straight into
    # the output projection (no concat, no (B,H,N,dh) intermediate).
    @pl.when(ki == nk - 1)
    def _():
        inv_l = pl.reciprocal(l_sc[...], approx=True)
        head_out = (acc_sc[...] * inv_l).astype(wout_ref.dtype)  # (tq, dh) bf16
        oacc_sc[...] += jnp.dot(head_out, wout_ref[...],
                                preferred_element_type=jnp.float32)

    @pl.when(jnp.logical_and(h == nh - 1, ki == nk - 1))
    def _():
        o_ref[0] = oacc_sc[...].astype(o_ref.dtype)


def attention_forward(x, gamma, beta, w_qkv, w_out, *, heads, dim_head,
                      eps=1e-5, q_block=256, kv_block=256, ln_block=256):
    B, N, D = x.shape
    inner = heads * dim_head
    assert w_qkv.shape == (D, 3 * inner)
    assert w_out.shape == (inner, D)
    scale = dim_head ** (-0.5)
    vmem_limit = _vmem_limit_bytes()

    # Fold the softmax scale into the q columns of W_qkv (mathematically
    # identical, removes an N*dh scaling from the kernel); cast weights bf16.
    w_qkv_scaled = jnp.concatenate(
        [w_qkv[:, :inner] * scale, w_qkv[:, inner:]], axis=-1).astype(jnp.bfloat16)
    w_out_bf16 = w_out.astype(jnp.bfloat16)

    # ---- Stage 1: LayerNorm + QKV projection -> (B, N, 3*inner) bf16 ----
    tn = _pick_tile(N, ln_block)
    ln_cost = pl.CostEstimate(
        flops=int(2 * B * N * D * 3 * inner + 8 * B * N * D),
        transcendentals=int(B * N),
        bytes_accessed=int(B * N * D * 4 + D * 3 * inner * 2 + B * N * 3 * inner * 2),
    )
    qkv = pl.pallas_call(
        functools.partial(_ln_qkv_kernel, eps=eps),
        out_shape=jax.ShapeDtypeStruct((B, N, 3 * inner), jnp.bfloat16),
        grid=(B, N // tn),
        in_specs=[
            pl.BlockSpec((1, tn, D), lambda b, i: (b, i, 0)),          # x
            pl.BlockSpec((1, D), lambda b, i: (0, 0)),                 # gamma
            pl.BlockSpec((1, D), lambda b, i: (0, 0)),                 # beta
            pl.BlockSpec((D, 3 * inner), lambda b, i: (0, 0)),         # W_qkv
        ],
        out_specs=pl.BlockSpec((1, tn, 3 * inner), lambda b, i: (b, i, 0)),
        compiler_params=pltpu.CompilerParams(
            dimension_semantics=("parallel", "parallel"),
            vmem_limit_bytes=vmem_limit),
        cost_estimate=ln_cost,
    )(x, gamma.reshape(1, D), beta.reshape(1, D), w_qkv_scaled)

    # Layout plumbing (wrapper-side): (B, N, 3, H, dh) -> (3, B, H, N, dh).
    qkv = qkv.reshape(B, N, 3, heads, dim_head).transpose(2, 0, 3, 1, 4)
    q, k, v = qkv[0], qkv[1], qkv[2]                # each (B, H, N, dh) bf16

    # ---- Stage 2: flash attention + fused output projection ----
    tq = _pick_tile(N, q_block)
    tk = _pick_tile(N, kv_block)
    attn_cost = pl.CostEstimate(
        flops=int(4 * B * heads * N * N * dim_head + 2 * B * N * inner * D),
        transcendentals=int(B * heads * N * N),
        bytes_accessed=int(3 * B * heads * N * dim_head * 2
                           + inner * D * 2 + B * N * D * x.dtype.itemsize),
    )
    out = pl.pallas_call(
        _flash_attn_out_kernel,
        out_shape=jax.ShapeDtypeStruct((B, N, D), x.dtype),
        grid=(B, N // tq, heads, N // tk),
        in_specs=[
            pl.BlockSpec((1, 1, tq, dim_head), lambda b, qi, h, ki: (b, h, qi, 0)),
            pl.BlockSpec((1, 1, tk, dim_head), lambda b, qi, h, ki: (b, h, ki, 0)),
            pl.BlockSpec((1, 1, tk, dim_head), lambda b, qi, h, ki: (b, h, ki, 0)),
            pl.BlockSpec((dim_head, D), lambda b, qi, h, ki: (h, 0)),  # W_out rows of head h
        ],
        out_specs=pl.BlockSpec((1, tq, D), lambda b, qi, h, ki: (b, qi, 0)),
        scratch_shapes=[
            pltpu.VMEM((tq, 1), jnp.float32),          # running max m
            pltpu.VMEM((tq, 1), jnp.float32),          # running sum l
            pltpu.VMEM((tq, dim_head), jnp.float32),   # per-head acc
            pltpu.VMEM((tq, D), jnp.float32),          # output-proj accumulator
        ],
        compiler_params=pltpu.CompilerParams(
            dimension_semantics=("parallel", "parallel", "arbitrary", "arbitrary"),
            vmem_limit_bytes=vmem_limit),
        cost_estimate=attn_cost,
    )(q, k, v, w_out_bf16)
    return out


def attention_reference(x, gamma, beta, w_qkv, w_out, *, heads, dim_head, eps=1e-5):
    # Pure-JAX (f32) reference mirroring the PyTorch forward.
    B, N, D = x.shape
    inner = heads * dim_head
    mean = jnp.mean(x, axis=-1, keepdims=True)
    var = jnp.mean(jnp.square(x - mean), axis=-1, keepdims=True)
    xn = (x - mean) / jnp.sqrt(var + eps) * gamma + beta
    qkv = xn @ w_qkv
    q, k, v = jnp.split(qkv, 3, axis=-1)

    def to_heads(t):  # 'b n (h d) -> b h n d'
        return t.reshape(B, N, heads, dim_head).transpose(0, 2, 1, 3)

    q, k, v = map(to_heads, (q, k, v))
    dots = jnp.einsum('bhnd,bhmd->bhnm', q, k) * (dim_head ** -0.5)
    attn = jax.nn.softmax(dots, axis=-1)
    out = jnp.einsum('bhnm,bhmd->bhnd', attn, v)
    out = out.transpose(0, 2, 1, 3).reshape(B, N, inner)   # 'b h n d -> b n (h d)'
    return out @ w_out


if __name__ == "__main__":
    # Small deterministic config; small q/kv blocks so the flash tiling,
    # online softmax, and per-head output-projection accumulation are
    # actually exercised (4 q tiles x 2 heads x 4 kv tiles per batch).
    B, N, D = 2, 32, 32
    heads, dim_head = 2, 16
    inner = heads * dim_head

    key = jax.random.PRNGKey(0)
    kx, kqkv, kout = jax.random.split(key, 3)

    x = jax.random.normal(kx, (B, N, D), dtype=jnp.float32)
    gamma = jnp.ones((D,), dtype=jnp.float32)     # PyTorch LayerNorm init
    beta = jnp.zeros((D,), dtype=jnp.float32)
    w_qkv = 0.05 * jax.random.normal(kqkv, (D, 3 * inner), dtype=jnp.float32)
    w_out = 0.05 * jax.random.normal(kout, (inner, D), dtype=jnp.float32)

    out = attention_forward(x, gamma, beta, w_qkv, w_out,
                            heads=heads, dim_head=dim_head,
                            q_block=8, kv_block=8, ln_block=8)
    out = jax.block_until_ready(out)

    ref = attention_reference(x, gamma, beta, w_qkv, w_out,
                              heads=heads, dim_head=dim_head)
    assert out.shape == (B, N, D)
    # bf16 MXU inputs + approx reciprocal -> slightly looser tolerance vs f32 ref.
    assert jnp.allclose(out, ref, rtol=2e-2, atol=2e-2), "mismatch vs JAX reference"

    print("KERNEL_OK")
</pallas_src>

<mosaic_0001>
module attributes {stable_mosaic.version = 11 : i64} {
  func.func @_ln_qkv_kernel(%arg0: i32, %arg1: i32, %arg2: memref<1x8x32xf32, #tpu.memory_space<vmem>>, %arg3: memref<1x32xf32, #tpu.memory_space<vmem>>, %arg4: memref<1x32xf32, #tpu.memory_space<vmem>>, %arg5: memref<32x96xbf16, #tpu.memory_space<vmem>>, %arg6: memref<1x8x96xbf16, #tpu.memory_space<vmem>>) attributes {dimension_semantics = [#tpu.dimension_semantics<parallel>, #tpu.dimension_semantics<parallel>], iteration_bounds = array<i64: 2, 4>, scalar_prefetch = 0 : i64, scratch_operands = 0 : i64, tpu.core_type = #tpu.core_type<tc>, window_params = [{transform_indices = @transform_0, window_bounds = array<i64: 1, 8, 32>}, {pipeline_mode = #tpu.pipeline_mode<synchronous>, transform_indices = @transform_1, window_bounds = array<i64: 1, 32>}, {pipeline_mode = #tpu.pipeline_mode<synchronous>, transform_indices = @transform_2, window_bounds = array<i64: 1, 32>}, {pipeline_mode = #tpu.pipeline_mode<synchronous>, transform_indices = @transform_3, window_bounds = array<i64: 32, 96>}, {transform_indices = @transform_4, window_bounds = array<i64: 1, 8, 96>}]} {
    %c0 = arith.constant 0 : index
    %c0_0 = arith.constant 0 : index
    %c0_1 = arith.constant 0 : index
    %0 = vector.load %arg2[%c0, %c0_0, %c0_1] : memref<1x8x32xf32, #tpu.memory_space<vmem>>, vector<1x8x32xf32>
    %1 = vector.shape_cast %0 : vector<1x8x32xf32> to vector<8x32xf32>
    %c0_2 = arith.constant 0 : index
    %c0_3 = arith.constant 0 : index
    %2 = vector.load %arg3[%c0_2, %c0_3] : memref<1x32xf32, #tpu.memory_space<vmem>>, vector<1x32xf32>
    %c0_4 = arith.constant 0 : index
    %c0_5 = arith.constant 0 : index
    %3 = vector.load %arg4[%c0_4, %c0_5] : memref<1x32xf32, #tpu.memory_space<vmem>>, vector<1x32xf32>
    %cst = arith.constant dense<0.000000e+00> : vector<8xf32>
    %4 = vector.multi_reduction <add>, %1, %cst [1] : vector<8x32xf32> to vector<8xf32>
    %5 = vector.shape_cast %4 : vector<8xf32> to vector<8x1xf32>
    %cst_6 = arith.constant 3.200000e+01 : f32
    %6 = vector.broadcast %cst_6 : f32 to vector<8x1xf32>
    %7 = arith.divf %5, %6 : vector<8x1xf32>
    %8 = vector.broadcast %7 : vector<8x1xf32> to vector<8x32xf32>
    %9 = arith.subf %1, %8 : vector<8x32xf32>
    %10 = arith.mulf %9, %9 : vector<8x32xf32>
    %cst_7 = arith.constant dense<0.000000e+00> : vector<8xf32>
    %11 = vector.multi_reduction <add>, %10, %cst_7 [1] : vector<8x32xf32> to vector<8xf32>
    %12 = vector.shape_cast %11 : vector<8xf32> to vector<8x1xf32>
    %cst_8 = arith.constant 3.200000e+01 : f32
    %13 = vector.broadcast %cst_8 : f32 to vector<8x1xf32>
    %14 = arith.divf %12, %13 : vector<8x1xf32>
    %15 = vector.broadcast %7 : vector<8x1xf32> to vector<8x32xf32>
    %16 = arith.subf %1, %15 : vector<8x32xf32>
    %cst_9 = arith.constant 9.99999974E-6 : f32
    %17 = vector.broadcast %cst_9 : f32 to vector<8x1xf32>
    %18 = arith.addf %14, %17 : vector<8x1xf32>
    %19 = math.rsqrt %18 : vector<8x1xf32>
    %20 = vector.broadcast %19 : vector<8x1xf32> to vector<8x32xf32>
    %21 = arith.mulf %16, %20 : vector<8x32xf32>
    %22 = vector.broadcast %2 : vector<1x32xf32> to vector<8x32xf32>
    %23 = arith.mulf %21, %22 : vector<8x32xf32>
    %24 = vector.broadcast %3 : vector<1x32xf32> to vector<8x32xf32>
    %25 = arith.addf %23, %24 : vector<8x32xf32>
    %26 = arith.truncf %25 : vector<8x32xf32> to vector<8x32xbf16>
    %c0_10 = arith.constant 0 : index
    %c0_11 = arith.constant 0 : index
    %27 = vector.load %arg5[%c0_10, %c0_11] : memref<32x96xbf16, #tpu.memory_space<vmem>>, vector<32x96xbf16>
    %cst_12 = arith.constant dense<0.000000e+00> : vector<8x96xf32>
    %28 = tpu.matmul %26, %27, %cst_12 {dimension_numbers = #tpu.dot_dimension_numbers<[1], [0], [0], [1], [0, 0, 1, 1], [], []>} : vector<8x32xbf16>, vector<32x96xbf16>, vector<8x96xf32> -> vector<8x96xf32>
    %29 = arith.truncf %28 : vector<8x96xf32> to vector<8x96xbf16>
    %c0_13 = arith.constant 0 : index
    %c0_14 = arith.constant 0 : index
    %c0_15 = arith.constant 0 : index
    %30 = vector.load %arg6[%c0_13, %c0_14, %c0_15] : memref<1x8x96xbf16, #tpu.memory_space<vmem>>, vector<1x8x96xbf16>
    %31 = vector.shape_cast %30 : vector<1x8x96xbf16> to vector<8x96xbf16>
    %32 = vector.shape_cast %29 : vector<8x96xbf16> to vector<1x8x96xbf16>
    tpu.vector_store %arg6[%c0_13, %c0_14, %c0_15], %32 {strides = array<i32>} : memref<1x8x96xbf16, #tpu.memory_space<vmem>>, vector<1x8x96xbf16>,
    return
  }
  func.func @transform_0(%arg0: i32, %arg1: i32) -> (i32, i32, i32) {
    %c0_i32 = arith.constant 0 : i32
    %c0_i32_0 = arith.constant 0 : i32
    return %arg0, %arg1, %c0_i32 : i32, i32, i32
  }
  func.func @transform_1(%arg0: i32, %arg1: i32) -> (i32, i32) {
    %c0_i32 = arith.constant 0 : i32
    %c0_i32_0 = arith.constant 0 : i32
    %c0_i32_1 = arith.constant 0 : i32
    return %c0_i32, %c0_i32_0 : i32, i32
  }
  func.func @transform_2(%arg0: i32, %arg1: i32) -> (i32, i32) {
    %c0_i32 = arith.constant 0 : i32
    %c0_i32_0 = arith.constant 0 : i32
    %c0_i32_1 = arith.constant 0 : i32
    return %c0_i32, %c0_i32_0 : i32, i32
  }
  func.func @transform_3(%arg0: i32, %arg1: i32) -> (i32, i32) {
    %c0_i32 = arith.constant 0 : i32
    %c0_i32_0 = arith.constant 0 : i32
    %c0_i32_1 = arith.constant 0 : i32
    return %c0_i32, %c0_i32_0 : i32, i32
  }
  func.func @transform_4(%arg0: i32, %arg1: i32) -> (i32, i32, i32) {
    %c0_i32 = arith.constant 0 : i32
    %c0_i32_0 = arith.constant 0 : i32
    return %arg0, %arg1, %c0_i32 : i32, i32, i32
  }
}

</mosaic_0001>

<bundles_post_ra>
// kernel: tpu_custom_call.1
= control target key start
LH: loop header
LB: loop body
LE: loop exit
PB: predicated region body
PF: predicated region fallthrough
CT: control target
= control target key end

     0   :  { %s1025_s0 = inlined_call_operand.hbm [shape: f32[2,32,32], index: 0, kind: input, shape index: {}]   ;;  %s1026_s1 = inlined_call_operand.vmem [shape: f32[1,32], index: 1, kind: input, shape index: {}]   ;;  %s1027_s2 = inlined_call_operand.vmem [shape: f32[1,32], index: 2, kind: input, shape index: {}]   ;;  %s1028_s3 = inlined_call_operand.hbm [shape: bf16[32,96], index: 3, kind: input, shape index: {}]   ;;  %s1029_s4 = inlined_call_operand.hbm [shape: bf16[2,32,96], index: 4, kind: output, shape index: {}]  }
   0x1   :  { %1038 = sst [smem:[#allocation14_spill]] %s1028_s3 }
   0x2   :  { %1039 = sst [smem:[#allocation15_spill]] %s1029_s4 }
   0x3   :  { %9 = vsyncpa [#allocation3], 0 }
   0x4   :  { %11 = vsyncpa [#allocation3 + $0x1], 0 }
   0x5   :  { %12 = vsyncpa [#allocation6], 0 }
   0x6   :  { %13 = vsyncpa [#allocation4], 0 }
   0x7   :  { %15 = vsyncpa [#allocation4 + $0x1], 0  ;;  %s777_s15 = smov 0   ;;  %s779_s16 = smov 0  }
   0x8   :  { %s781_s17 = smov 0   ;;  %s783_s18 = smov 0  }
   0x9   :  { %s785_s19 = smov 0   ;;  %s787_s20 = smov 0  }
   0xa   :  { %s789_s21 = smov 0   ;;  %s791_s22 = smov 0  }
   0xb LB: > { %1040 = sst [smem:[#allocation11_spill]] %s715_s15  ;;  %s453_s23 = sadd.s32 4294967295, %s743_s22   ;;  %s743_s22 = sphi %s791_s22, %s21_s22   ;;  %s739_s21 = sphi %s789_s21, %s1068_s21   ;;  %s735_s20 = sphi %s787_s20, %s1067_s20   ;;  %s731_s19 = sphi %s785_s19, %s1066_s19   ;;  %s727_s18 = sphi %s783_s18, %s1065_s18   ;;  %s723_s17 = sphi %s781_s17, %s1064_s17   ;;  %s719_s16 = sphi %s779_s16, %s1063_s16   ;;  %s715_s15 = sphi %s777_s15, %s1062_s15  }
   0xc   : > { %s454_s24 = sadd.s32 4294967294, %s743_s22   ;;  %p55_p0 = scmp.ne.s32.totalorder %s719_s16, %s715_s15 }
   0xd   : > { %p821_p1 = scmp.eq.s32.totalorder %s453_s23, 0  ;;  %p825_p2 = scmp.eq.s32.totalorder %s453_s23, 7 }
   0xe   : > { %p150_p3 = scmp.eq.s32.totalorder %s454_s24, 7  ;;  %p455_p5 = scmp.ge.s32.totalorder %s743_s22, 1 }
   0xf   : > { %s1041_s25 = scalar_select %p821_p1, 1, 0 }
  0x10   : > { %s1042_s26 = scalar_select %p825_p2, 1, 0 }
  0x11   : > { %p831_p4 = por %p821_p1, %p55_p0  ;;  %p836_p6 = por %p150_p3, %p55_p0 }
  0x12   : > { %p157_p7 = scmp.lt.s32.totalorder %s743_s22, 9  ;;  %s745_s30 = smov [#allocation5]  }
  0x13   : > { %s1043_s27 = scalar_select %p831_p4, 1, 0 }
  0x14   : > { %s1044_s28 = scalar_select %p836_p6, 1, 0 }
  0x15   : > { %p841_p8 = pnand %p455_p5, %p157_p7  ;;  %s175_s5 = sshll.u32 %s745_s30, 4  ;;  %s176_s5 = int_to_ptr.vmem [resolvable:$true] %s175_s5 }
  0x16   : > { %1045 = sst [smem:[#allocation12_spill]] %s1044_s28  ;;  %s1048_s3 = sld [smem:[#allocation14_spill]] }
  0x17   : > { %s1046_s29 = scalar_select %p841_p8, 1, 0 }
  0x18   : > { %p494_p9 = pneg %p841_p8 }
  0x1a   : > { %p849_p10 = pnand %p494_p9, %p821_p1 }
  0x1c   : > { %s583_s9 = scalar_lea.hbm %s1048_s3, 256  ;;  %p585_p12 = pneg %p849_p10 }
  0x1d   : > { %p584_p11 = scmp.ne.s32.totalorder %s1048_s3, %s583_s9  ;;  %p590_p3 = scmp.lt.u32.totalorder %s583_s9, %s1048_s3 }
  0x1f   : > { %p586_p13 = pnand %p585_p12, %p584_p11 }
  0x21   : > { %p587_p0 = pneg %p586_p13 }
  0x23   : > { %p592_p5 = pnand %p590_p3, %p587_p0 }
  0x25   : > { %595 = shalt.err (!%p592_p5)
}
  0x26   : > { %s596_s14 = scalar_lea.vmem %s176_s5, 256  ;;  %p604_p1 = scmp.lt.s32.totalorder %s176_s5, %s176_s5 }
  0x27   : > { %p597_p7 = scmp.ne.s32.totalorder %s176_s5, %s596_s14  ;;  %p605_p4 = scmp.lt.s32.totalorder %s596_s14, %s596_s14 }
  0x29   : > { %p599_p9 = pnand %p597_p7, %p585_p12  ;;  %p606_p8 = por %p605_p4, %p604_p1 }
  0x2b   : > { %p600_p6 = pneg %p599_p9 }
  0x2d   : > { %p607_p2 = pnand %p606_p8, %p600_p6 }
  0x2f   : > { %610 = shalt.err (!%p607_p2)
}
  0x30   : > { %s746_s23 = smov 64   ;;  %s747_s24 = smov 4  }
  0x31   : > { %497 = dma.hbm_to_vmem [thread:$0]  (!%p849_p10), %s1048_s3, 256, %s176_s5, [#allocation6], %s746_s23, %s746_s23, %s747_s24  }
  0x32   : > { %s30_s8 = sadd.s32 1, %s735_s20  ;;  %s33_s9 = sadd.s32 1, %s739_s21 }
  0x33   : > { %p31_p1 = scmp.ge.s32.totalorder %s30_s8, 4  ;;  %s42_s10 = sadd.s32 1, %s723_s17 }
  0x34   : > { %p49_p2 = scmp.ne.s32.totalorder %s723_s17, %s719_s16  ;;  %p50_p4 = scmp.eq.s32.totalorder %s743_s22, 0 }
  0x35   : > { %s1070_s8 = smov (%p31_p1, %s30_s8), 0  ;;  %s1072_s9 = smov (!%p31_p1, %s33_s9), %s739_s21 }
  0x36   : > { %1049 = sst [smem:[#allocation13_spill]] %s1070_s8  ;;  %s38_s11 = ssub.s32 %s735_s20, %s1070_s8 }
  0x37   : > { %p35_p6 = scmp.ge.s32.totalorder %s1072_s9, 2  ;;  %p1050_p8 = scmp.ne.s32.totalorder %s1042_s26, 0 }
  0x38   : > { %p886_p10 = por %p50_p4, %p49_p2  ;;  %p507_p12 = scmp.lt.s32.totalorder %s743_s22, 8 }
  0x39   : > { %p882_p11 = por %p1050_p8, %p49_p2  ;;  %s1074_s9 = smov (%p35_p6, %s1072_s9), 0 }
  0x3a   : > { %s189_s12 = sand.u32 1, %s723_s17   ;;  %s459_s13 = sshll.u32 %s739_s21, 2 }
  0x3b   : > { %s37_s14 = ssub.s32 %s739_s21, %s1074_s9  ;;  %s458_s24 = sshll.u32 %s189_s12, 3 }
  0x3c   : > { %s39_s23 = sor.u32 %s38_s11, %s37_s14  ;;  %s198_s26 = sadd.s32 %s735_s20, %s459_s13 }
  0x3d   : > { %p40_p13 = scmp.eq.s32.totalorder %s39_s23, 0  ;;  %s193_s30 = scalar_lea.vmem [#allocation2], %s458_s24 }
  0x3e   : > { %s202_s7 = sshll.u32 %s193_s30, 4  ;;  %s460_s8 = sshll.u32 %s198_s26, 7  ;;  %s901_s7 = int_to_ptr.vmem [resolvable:$true] %s202_s7 }
  0x3f   : > { %s899_s3 = scalar_select %p40_p13, %s723_s17, %s42_s10  }
  0x40   : > { %s906_s4 = scalar_lea.hbm %s1025_s0, %s460_s8  ;;  %p912_p0 = pnand %p507_p12, %p886_p10 }
  0x41   : > { %s190_s10 = scalar_lea.sflag [#allocation3], %s189_s12  ;;  %s611_s13 = scalar_lea.hbm %s906_s4, 128 }
  0x42   : > { %p612_p3 = scmp.ne.s32.totalorder %s906_s4, %s611_s13  ;;  %p613_p5 = pneg %p912_p0 }
  0x43   : > { %s616_s8 = scalar_lea.hbm %s1025_s0, 1024  ;;  %p617_p1 = scmp.lt.u32.totalorder %s906_s4, %s1025_s0 }
  0x44   : > { %p614_p7 = pnand %p613_p5, %p612_p3  ;;  %p618_p2 = scmp.lt.u32.totalorder %s616_s8, %s611_s13 }
  0x45   : > { %p620_p6 = scmp.lt.u32.totalorder %s611_s13, %s906_s4 }
  0x46   : > { %p615_p9 = pneg %p614_p7  ;;  %p619_p4 = por %p618_p2, %p617_p1 }
  0x48   : > { %p621_p8 = por %p620_p6, %p619_p4 }
  0x4a   : > { %p622_p10 = pnand %p621_p8, %p615_p9 }
  0x4c   : > { %625 = shalt.err (!%p622_p10)
}
  0x4d   : > { %s626_s12 = scalar_lea.vmem %s901_s7, 128  ;;  %s748_s23 = smov [#allocation2]  }
  0x4e   : > { %p627_p12 = scmp.ne.s32.totalorder %s901_s7, %s626_s12  ;;  %s631_s24 = sshll.u32 %s748_s23, 4  ;;  %s632_s24 = int_to_ptr.vmem [resolvable:$false] %s631_s24 }
  0x4f   : > { %s633_s26 = scalar_lea.vmem %s632_s24, 256  ;;  %p634_p7 = scmp.lt.s32.totalorder %s901_s7, %s632_s24 }
  0x50   : > { %p629_p13 = pnand %p627_p12, %p613_p5  ;;  %p635_p1 = scmp.lt.s32.totalorder %s633_s26, %s626_s12 }
  0x52   : > { %p630_p3 = pneg %p629_p13  ;;  %p636_p2 = por %p635_p1, %p634_p7 }
  0x54   : > { %p637_p4 = pnand %p636_p2, %p630_p3 }
  0x56   : > { %640 = shalt.err (!%p637_p4)
}
  0x57   : > { %501 = dma.hbm_to_vmem [thread:$0]  (!%p912_p0), %s906_s4, 128, %s901_s7, %s190_s10  }
  0x58   : > { %p1054_p9 = scmp.ne.s32.totalorder %s1046_s29, 0 }
  0x59   : > { %s944_s30 = sand.u32 (!%p1054_p9), 1, %s719_s16   ;;  %p1055_p5 = scmp.ne.s32.totalorder (!%p1054_p9), %s1043_s27, 0 }
  0x5a   : > { %211 = sbr.rel (%p1054_p9) target bundleno = 645 (0x285), region = 36  ;;  %s462_s13 = sshll.u32 (!%p1054_p9), %s944_s30, 3 }
  0x5b   : > { %s214_s15 = scalar_lea.sflag (!%p1054_p9), [#allocation3], %s944_s30  ;;  %s217_s28 = scalar_lea.vmem (!%p1054_p9), [#allocation2], %s462_s13 }
  0x61   : > { %702 = dma.done.wait (%p1055_p5), %s214_s15, 128  }
  0x62   : > { %704 = vsyncadd (%p1055_p5), %s214_s15, 4294967168  ;;  %p1056_p6 = scmp.ne.s32.totalorder %s1041_s25, 0 }
  0x64   : > { %706 = dma.done.wait (%p1056_p6), [#allocation6], 256  }
  0x65   : > { %708 = vsyncadd (%p1056_p6), [#allocation6], 4294967040  ;;  %vm250_vm0 = vcmask 261120   ;;  %v247_v0 = vld [vmem:[%s217_s28] sm:$0xff]  ;;  %v579_v7 = vld [vmem:[#allocation5] sm:$0xff]   ;;  %v749_v8 = vmov 0.0  }
  0x66   : > { %v251_v1 = vsel %vm250_vm0, %v247_v0, 0.0  ;;  %478 = vmatprep.subr.bf16.mxu0 %v749_v8  ;;  %v580_v9 = vld [vmem:[#allocation5 + $0x8] sm:$0xff]   ;;  %vm750_vm1 = vmmov 0   ;;  %v465_v14 = vld [vmem:[%s1026_s1] ss:$0 sm:$0xff]  ;;  %s464_s7 = sshll.u32 %s944_s30, 2 }
  0x67   : > { %252 = vadd.xlane.f32.xlu0 %v251_v1  ;;  %479 = vmatpush3.bf16.msra.mxu0 %v579_v7  ;;  %v466_v16 = vld [vmem:[%s1027_s2] ss:$0 sm:$0xff]  ;;  %s471_s11 = sshll.u32 %s731_s19, 2  ;;  %s245_s5 = scalar_lea.vmem [#allocation7], %s464_s7  ;;  %vm340_vm2 = vcmask 781312  }
  0x68   : > { %482 = vmatprep.mubr.msk.bf16.mxu0 %vm750_vm1, %v749_v8  ;;  %480 = vmatprep.subr.bf16.mxu0 %v749_v8  ;;  %s354_s10 = sadd.s32 %s727_s18, %s471_s11  ;;  %s358_s14 = sshll.u32 %s245_s5, 4  ;;  %s973_s14 = int_to_ptr.vmem [resolvable:$true] %s358_s14 }
  0x69   : > { %s472_s8 = sshll.u32 %s354_s10, 6  ;;  %s1057_s24 = sld [smem:[#allocation15_spill]] }
  0x6a   : > { %s343_s18 = scalar_lea.sflag [#allocation4], %s944_s30  ;;  %s641_s19 = scalar_lea.vmem %s973_s14, 64 }
  0x6b   : > { %481 = vmatpush3.bf16.msra.mxu0 %v580_v9  ;;  %p642_p0 = scmp.ne.s32.totalorder %s973_s14, %s641_s19  ;;  %s751_s13 = smov [#allocation7]  }
  0x6c   : > { %s645_s15 = sshll.u32 %s751_s13, 4  ;;  %s646_s15 = int_to_ptr.vmem [resolvable:$false] %s645_s15 }
  0x6d   : > { %p643_p8 = pnand %p642_p0, %p882_p11  ;;  %s647_s28 = scalar_lea.vmem %s646_s15, 128 }
  0x6e   : > { %p648_p12 = scmp.lt.s32.totalorder %s973_s14, %s646_s15  ;;  %p649_p13 = scmp.lt.s32.totalorder %s647_s28, %s641_s19 }
  0x6f   : > { %s971_s26 = scalar_lea.hbm %s1057_s24, %s472_s8  ;;  %p644_p10 = pneg %p643_p8 }
  0x70   : > { %p650_p3 = por %p649_p13, %p648_p12 }
  0x72   : > { %p651_p7 = pnand %p650_p3, %p644_p10 }
  0xf4   : > { %v253_v2 = vpop.xlane.xlu0 %252 }
  0xf5   : > { %v255_v3 = vmul.f32 0.03125, %v253_v2 }
  0xf7   : > { %v256_v4 = vsub.f32 %v247_v0, %v255_v3 }
  0xf9   : > { %v257_v5 = vmul.f32 %v256_v4, %v256_v4 }
  0xfb   : > { %v258_v6 = vsel %vm250_vm0, %v257_v5, 0.0 }
  0xfc   : > { %259 = vadd.xlane.f32.xlu0 %v258_v6 }
 0x189   : > { %v260_v10 = vpop.xlane.xlu0 %259 }
 0x18a   : > { %v261_v11 = vmul.f32 0.03125, %v260_v10 }
 0x18c   : > { %v262_v12 = vadd.f32 1e-05, %v261_v11 }
 0x18e   : > { %581 = vrsqrt.f32 %v262_v12 }
 0x198   : > { %v582_v13 = vpop.eup %581 }
 0x199   : > { %v264_v15 = vmul.f32 %v582_v13, %v256_v4 }
 0x19b   : > { %v271_v17 = vmul.f32 %v465_v14, %v264_v15 }
 0x19d   : > { %v278_v18 = vadd.f32 %v466_v16, %v271_v17 }
 0x19f   : > { %v279_v19 = vpack.c.bf16 %v278_v18, %v278_v18 }
 0x1a1   : > { %483 = vmatmul.mubr.msk.bf16.vlgmr.msra.gmra.mrb[0].mxu0 %vm250_vm0, %v279_v19 }
 0x274   : > { %v333_v20 = vpop.f32.mrb[0].mxu0 }
 0x275   : > { %v339_v21 = vpack.c.bf16 %v333_v20, %v333_v20  ;;  %v484_v22 = vpop.f32.mrb[1].mxu0 }
 0x276   : > { %v336_v23 = vpop.f32.mrb[2].mxu0 }
 0x277   : > { %v485_v24 = vpop.f32.mrb[3].mxu0  ;;  %341 = vst.msk [vmem:[%s245_s5] sm:$0xf] %vm340_vm2, %v339_v21 }
 0x278   : > { %654 = shalt.err (!%p651_p7)
}
 0x279   : > { %s655_s30 = scalar_lea.hbm %s971_s26, 64  ;;  %s659_s27 = scalar_lea.hbm %s1057_s24, 512 }
 0x27a   : > { %p656_p1 = scmp.ne.s32.totalorder %s971_s26, %s655_s30  ;;  %p660_p9 = scmp.lt.u32.totalorder %s971_s26, %s1057_s24 }
 0x27b   : > { %p661_p5 = scmp.lt.u32.totalorder %s659_s27, %s655_s30  ;;  %p663_p0 = scmp.lt.u32.totalorder %s655_s30, %s971_s26 }
 0x27c   : > { %p657_p2 = pnand %p656_p1, %p882_p11 }
 0x27d   : > { %p662_p6 = por %p661_p5, %p660_p9 }
 0x27e   : > { %p658_p4 = pneg %p657_p2 }
 0x27f   : > { %p664_p8 = por %p663_p0, %p662_p6 }
 0x281   : > { %p665_p10 = pnand %p664_p8, %p658_p4 }
 0x283   : > { %668 = shalt.err (!%p665_p10)
}
 0x284   : > { %492 = dma.vmem_to_hbm [thread:$0]  (%p882_p11), %s973_s14, 64, %s971_s26, %s343_s18  }
 0x285 PF: > { %s1058_s11 = sld [smem:[#allocation11_spill]]  ;;  %s1059_s10 = sld [smem:[#allocation12_spill]] }
 0x286   : > { %p509_p12 = scmp.ge.s32.totalorder %s743_s22, 2 }
 0x28b   : > { %s370_s8 = sand.u32 1, %s1058_s11   ;;  %p1060_p13 = scmp.ne.s32.totalorder %s1059_s10, 0 }
 0x28c   : > { %s371_s5 = scalar_lea.sflag [#allocation4], %s370_s8 }
 0x28d   : > { %p503_p3 = pnand %p509_p12, %p1060_p13 }
 0x28f   : > { %710 = dma.done.wait (!%p503_p3), %s371_s5, 64  }
 0x290   : > { %712 = vsyncadd (!%p503_p3), %s371_s5, 4294967232  ;;  %s21_s22 = sadd.s32 1, %s743_s22   ;;  %s1061_s6 = sld [smem:[#allocation13_spill]] }
 0x291   : > { %p18_p7 = scmp.ge.s32.totalorder %s21_s22, 10   ;;  %s1062_s15 = smov %s719_s16 }
 0x292   : > { %s1063_s16 = smov %s723_s17  ;;  %s1064_s17 = smov %s899_s3 }
 0x293   : > { %s1065_s18 = smov %s735_s20  ;;  %s1066_s19 = smov %s739_s21 }
 0x294   : > { %s1068_s21 = smov %s1074_s9  ;;  %20 = sbr.rel (!%p18_p7) target bundleno = 11 (0xb), region = 85 }
 0x296   : > { %s1067_s20 = smov %s1061_s6 }
 0x29b   :  { %376 = vsyncpa [#allocation3], 1 }
 0x29c   :  { %378 = vsyncpa [#allocation3 + $0x1], 1 }
 0x29d   :  { %379 = vsyncpa [#allocation6], 1 }
 0x29e   :  { %380 = vsyncpa [#allocation4], 1 }
 0x29f   :  { %382 = vsyncpa [#allocation4 + $0x1], 1 }

</bundles_post_ra>
